<compile_context>
chip_gen: v5e
topology: v5e:2x2
jax: 0.10.0
libtpu: 0.0.40
codegen_flags: <defaults>
</compile_context>

<pallas_src>
import functools

import jax
import jax.numpy as jnp
from jax import lax
from jax.experimental import pallas as pl
from jax.experimental.pallas import tpu as pltpu

LANE = 128
SUBLANE = 8
MAX_ROW_TILE = 2048  # 2048 * 128 * 4 B = 1 MiB per input block (f32)


def _l1_sum_kernel(a_ref, b_ref, out_ref, acc_ref, *, row_tile, inv_count,
                   valid_rows, need_mask):
    i = pl.program_id(0)

    @pl.when(i == 0)
    def _():
        acc_ref[...] = jnp.zeros_like(acc_ref)

    a = a_ref[...].astype(jnp.float32)
    b = b_ref[...].astype(jnp.float32)
    absdiff = jnp.abs(a - b)

    if need_mask:
        # Final block extends past the array: those VMEM rows are undefined.
        # Mask BEFORE the sum (cheap VPU select, hidden under the input DMA).
        row0 = i * row_tile
        rid = lax.broadcasted_iota(jnp.int32, (row_tile, 1), 0) + row0
        absdiff = jnp.where(rid < valid_rows, absdiff, jnp.float32(0.0))

    # Pure-VPU partial reduction into a single-vreg (8,128) accumulator:
    # (row_tile, 128) -> (row_tile//8, 8, 128), sum over the leading axis.
    acc_ref[...] += jnp.sum(
        absdiff.reshape(row_tile // SUBLANE, SUBLANE, LANE), axis=0)

    @pl.when(i == pl.num_programs(0) - 1)
    def _():
        # One-time cross-lane/sublane reduce + scale in the epilogue.
        out_ref[0, 0] = jnp.sum(acc_ref[...]) * jnp.float32(inv_count)


def feat_recon_l1_loss(feat_recon, feat_real):
    """mean(|feat_recon - feat_real|) over all elements -> f32 scalar."""
    assert feat_recon.shape == feat_real.shape
    n_elem = feat_recon.size

    a = feat_recon.reshape(-1)
    b = feat_real.reshape(-1)

    # Tiny pad (< 1024 elems) to a multiple of 8*128 so the data views as
    # sublane-aligned (rows, 128).  Padded tail is zero in BOTH inputs so it
    # contributes nothing; we divide by the true element count.
    chunk = SUBLANE * LANE
    padded = ((n_elem + chunk - 1) // chunk) * chunk
    if padded != n_elem:
        pad = padded - n_elem
        a = jnp.pad(a, (0, pad))
        b = jnp.pad(b, (0, pad))

    rows = padded // LANE            # multiple of 8
    a2 = a.reshape(rows, LANE)
    b2 = b.reshape(rows, LANE)

    row_tile = min(MAX_ROW_TILE, rows)   # never larger than the array
    n_tiles = (rows + row_tile - 1) // row_tile
    need_mask = (rows % row_tile) != 0

    kernel = functools.partial(
        _l1_sum_kernel,
        row_tile=row_tile,
        inv_count=1.0 / float(n_elem),
        valid_rows=rows,
        need_mask=need_mask,
    )

    bytes_accessed = n_elem * (
        feat_recon.dtype.itemsize + feat_real.dtype.itemsize) + 4

    out = pl.pallas_call(
        kernel,
        out_shape=jax.ShapeDtypeStruct((1, 1), jnp.float32),
        grid_spec=pltpu.PrefetchScalarGridSpec(
            num_scalar_prefetch=0,
            grid=(n_tiles,),
            in_specs=[
                pl.BlockSpec((row_tile, LANE), lambda i: (i, 0)),
                pl.BlockSpec((row_tile, LANE), lambda i: (i, 0)),
            ],
            out_specs=pl.BlockSpec(
                (1, 1), lambda i: (0, 0),
                memory_space=pltpu.MemorySpace.SMEM),
            scratch_shapes=[pltpu.VMEM((SUBLANE, LANE), jnp.float32)],
        ),
        compiler_params=pltpu.CompilerParams(
            dimension_semantics=("arbitrary",),
        ),
        cost_estimate=pl.CostEstimate(
            flops=3 * n_elem,
            transcendentals=0,
            bytes_accessed=bytes_accessed,
        ),
    )(a2, b2)
    return out[0, 0]


if __name__ == "__main__":
    key = jax.random.PRNGKey(0)
    k1, k2, k3, k4, k5, k6 = jax.random.split(key, 6)

    # Feature maps, NCHW convention: batch=2, channels=4, spatial=16x16.
    feat_recon = jax.random.normal(k1, (2, 4, 16, 16), dtype=jnp.float32)
    feat_real = jax.random.normal(k2, (2, 4, 16, 16), dtype=jnp.float32)
    loss = feat_recon_l1_loss(feat_recon, feat_real)
    jax.block_until_ready(loss)
    ref = jnp.mean(jnp.abs(feat_recon - feat_real))
    assert jnp.allclose(loss, ref, rtol=1e-5, atol=1e-6), (loss, ref)

    # Ragged shape (1155 elems, not a multiple of 128) exercises the tiny-pad
    # path (single exact block, no in-kernel mask).
    fr2 = jax.random.normal(k3, (3, 5, 7, 11), dtype=jnp.float32)
    fx2 = jax.random.normal(k4, (3, 5, 7, 11), dtype=jnp.float32)
    loss2 = feat_recon_l1_loss(fr2, fx2)
    jax.block_until_ready(loss2)
    ref2 = jnp.mean(jnp.abs(fr2 - fx2))
    assert jnp.allclose(loss2, ref2, rtol=1e-5, atol=1e-6), (loss2, ref2)

    # Larger feature map: multiple grid steps with a partial final block,
    # exercising the cross-step accumulator + in-kernel row mask.
    fr3 = jax.random.normal(k5, (4, 8, 96, 96), dtype=jnp.float32)
    fx3 = jax.random.normal(k6, (4, 8, 96, 96), dtype=jnp.float32)
    loss3 = feat_recon_l1_loss(fr3, fx3)
    jax.block_until_ready(loss3)
    ref3 = jnp.mean(jnp.abs(fr3 - fx3))
    assert jnp.allclose(loss3, ref3, rtol=1e-5, atol=1e-6), (loss3, ref3)

    print("KERNEL_OK")
</pallas_src>

<mosaic_0001>
module attributes {stable_mosaic.version = 11 : i64} {
  func.func @_l1_sum_kernel(%arg0: i32, %arg1: memref<16x128xf32, #tpu.memory_space<vmem>>, %arg2: memref<16x128xf32, #tpu.memory_space<vmem>>, %arg3: memref<1x1xf32, #tpu.memory_space<smem>>, %arg4: memref<8x128xf32, #tpu.memory_space<vmem>>) attributes {dimension_semantics = [#tpu.dimension_semantics<arbitrary>], iteration_bounds = array<i64: 1>, scalar_prefetch = 0 : i64, scratch_operands = 1 : i64, tpu.core_type = #tpu.core_type<tc>, window_params = [{transform_indices = @transform_0, window_bounds = array<i64: 16, 128>}, {transform_indices = @transform_1, window_bounds = array<i64: 16, 128>}, {transform_indices = @transform_2, window_bounds = array<i64: 1, 1>}]} {
    %c0_i32 = arith.constant 0 : i32
    %0 = arith.cmpi eq, %arg0, %c0_i32 : i32
    %1 = arith.extui %0 : i1 to i32
    %c0_i32_0 = arith.constant 0 : i32
    %2 = arith.cmpi ne, %1, %c0_i32_0 : i32
    scf.if %2 {
      %cst_10 = arith.constant 0.000000e+00 : f32
      %15 = vector.broadcast %cst_10 : f32 to vector<8x128xf32>
      %c0_11 = arith.constant 0 : index
      %c0_12 = arith.constant 0 : index
      %16 = vector.load %arg4[%c0_11, %c0_12] : memref<8x128xf32, #tpu.memory_space<vmem>>, vector<8x128xf32>
      tpu.vector_store %arg4[%c0_11, %c0_12], %15 {strides = array<i32>} : memref<8x128xf32, #tpu.memory_space<vmem>>, vector<8x128xf32>,
    } else {
    }
    %c0 = arith.constant 0 : index
    %c0_1 = arith.constant 0 : index
    %3 = vector.load %arg1[%c0, %c0_1] : memref<16x128xf32, #tpu.memory_space<vmem>>, vector<16x128xf32>
    %c0_2 = arith.constant 0 : index
    %c0_3 = arith.constant 0 : index
    %4 = vector.load %arg2[%c0_2, %c0_3] : memref<16x128xf32, #tpu.memory_space<vmem>>, vector<16x128xf32>
    %5 = arith.subf %3, %4 : vector<16x128xf32>
    %6 = math.absf %5 : vector<16x128xf32>
    %c0_4 = arith.constant 0 : index
    %c0_5 = arith.constant 0 : index
    %7 = vector.load %arg4[%c0_4, %c0_5] : memref<8x128xf32, #tpu.memory_space<vmem>>, vector<8x128xf32>
    %8 = vector.shape_cast %6 : vector<16x128xf32> to vector<2x8x128xf32>
    %cst = arith.constant dense<0.000000e+00> : vector<8x128xf32>
    %9 = vector.multi_reduction <add>, %8, %cst [0] : vector<2x8x128xf32> to vector<8x128xf32>
    %10 = arith.addf %7, %9 : vector<8x128xf32>
    %c0_6 = arith.constant 0 : index
    %c0_7 = arith.constant 0 : index
    %11 = vector.load %arg4[%c0_6, %c0_7] : memref<8x128xf32, #tpu.memory_space<vmem>>, vector<8x128xf32>
    tpu.vector_store %arg4[%c0_6, %c0_7], %10 {strides = array<i32>} : memref<8x128xf32, #tpu.memory_space<vmem>>, vector<8x128xf32>,
    %c0_i32_8 = arith.constant 0 : i32
    %12 = arith.cmpi eq, %arg0, %c0_i32_8 : i32
    %13 = arith.extui %12 : i1 to i32
    %c0_i32_9 = arith.constant 0 : i32
    %14 = arith.cmpi ne, %13, %c0_i32_9 : i32
    scf.if %14 {
      %c0_10 = arith.constant 0 : index
      %c0_11 = arith.constant 0 : index
      %15 = vector.load %arg4[%c0_10, %c0_11] : memref<8x128xf32, #tpu.memory_space<vmem>>, vector<8x128xf32>
      %16 = vector.shape_cast %15 : vector<8x128xf32> to vector<1x8x128xf32>
      %cst_12 = arith.constant dense<0.000000e+00> : vector<1xf32>
      %17 = vector.multi_reduction <add>, %16, %cst_12 [1, 2] : vector<1x8x128xf32> to vector<1xf32>
      %18 = vector.shape_cast %17 : vector<1xf32> to vector<1x1x1xf32>
      %19 = vector.extract %18[0, 0, 0] : f32 from vector<1x1x1xf32>
      %cst_13 = arith.constant 4.8828125E-4 : f32
      %20 = arith.mulf %19, %cst_13 : f32
      %c0_14 = arith.constant 0 : index
      %c0_15 = arith.constant 0 : index
      %21 = memref.load %arg3[%c0_14, %c0_15] : memref<1x1xf32, #tpu.memory_space<smem>>
      memref.store %20, %arg3[%c0_14, %c0_15] : memref<1x1xf32, #tpu.memory_space<smem>>
    } else {
    }
    return
  }
  func.func @transform_0(%arg0: i32) -> (i32, i32) {
    %c0_i32 = arith.constant 0 : i32
    %c0_i32_0 = arith.constant 0 : i32
    return %arg0, %c0_i32 : i32, i32
  }
  func.func @transform_1(%arg0: i32) -> (i32, i32) {
    %c0_i32 = arith.constant 0 : i32
    %c0_i32_0 = arith.constant 0 : i32
    return %arg0, %c0_i32 : i32, i32
  }
  func.func @transform_2(%arg0: i32) -> (i32, i32) {
    %c0_i32 = arith.constant 0 : i32
    %c0_i32_0 = arith.constant 0 : i32
    %c0_i32_1 = arith.constant 0 : i32
    return %c0_i32, %c0_i32_0 : i32, i32
  }
}

</mosaic_0001>

<bundles_post_ra>
// kernel: tpu_custom_call.1
= control target key start
LH: loop header
LB: loop body
LE: loop exit
PB: predicated region body
PF: predicated region fallthrough
CT: control target
= control target key end

     0   :  { %7 = vsyncpa [#allocation4], 0  ;;  %s196_s0 = inlined_call_operand.hbm [shape: f32[16,128], index: 0, kind: input, shape index: {}]   ;;  %s197_s1 = inlined_call_operand.hbm [shape: f32[16,128], index: 1, kind: input, shape index: {}]   ;;  %s198_s2 = inlined_call_operand.hbm [shape: f32[1,1], index: 2, kind: output, shape index: {}]  }
   0x1   :  { %8 = vsyncpa [#allocation7], 0 }
   0x2   :  { %9 = vsyncpa [#allocation5], 0  ;;  %s14_s11 = sshll.u32 %s196_s0, 4  ;;  %s167_s12 = smov [#allocation3]   ;;  %s15_s11 = int_to_ptr.hbm [resolvable:$true] %s14_s11 }
   0x3   :  { %s16_s13 = sshll.u32 %s167_s12, 4  ;;  %s27_s16 = sshll.u32 %s197_s1, 4  ;;  %s17_s13 = int_to_ptr.vmem [resolvable:$true] %s16_s13  ;;  %s28_s16 = int_to_ptr.hbm [resolvable:$true] %s27_s16 }
   0x4   :  { %s168_s17 = smov 128   ;;  %s169_s18 = smov 8  }
   0x5   :  { %22 = dma.hbm_to_vmem [thread:$0]  %s15_s11, 256, %s17_s13, [#allocation4], %s168_s17, %s168_s17, %s169_s18  }
   0x6   :  { %s170_s19 = smov [#allocation6]  }
   0x7   :  { %s29_s20 = sshll.u32 %s170_s19, 4  ;;  %s30_s20 = int_to_ptr.vmem [resolvable:$true] %s29_s20 }
   0x8   :  { %35 = dma.hbm_to_vmem [thread:$0]  %s28_s16, 256, %s30_s20, [#allocation7], %s168_s17, %s168_s17, %s169_s18  }
   0x9   :  { %161 = dma.done.wait [#allocation4], 256  }
   0xa   :  { %162 = vsyncadd [#allocation4], 4294967040 }
   0xb   :  { %163 = dma.done.wait [#allocation7], 256  }
   0xc   :  { %164 = vsyncadd [#allocation7], 4294967040  ;;  %v49_v0 = vld [vmem:[#allocation3] sm:$0xff]  ;;  %v50_v1 = vld [vmem:[#allocation3 + $0x8] sm:$0xff]  ;;  %s82_s21 = sshll.u32 %s198_s2, 4  ;;  %s171_s24 = smov [#allocation8]   ;;  %s83_s21 = int_to_ptr.hbm [resolvable:$true] %s82_s21 }
   0xd   :  { %v51_v2 = vld [vmem:[#allocation6] sm:$0xff]  ;;  %v52_v3 = vld [vmem:[#allocation6 + $0x8] sm:$0xff] }
   0xe   :  { %v53_v4 = vsub.f32 %v49_v0, %v51_v2  ;;  %v54_v5 = vsub.f32 %v50_v1, %v52_v3 }
  0x10   :  { %v55_v6 = vand.u32 2147483647, %v53_v4  ;;  %v56_v7 = vand.u32 2147483647, %v54_v5 }
  0x12   :  { %v58_v8 = vadd.f32 %v56_v7, %v55_v6 }
  0x14   :  { %65 = vadd.xlane.f32.xlu0 %v58_v8 }
  0x87   :  { %v66_v9 = vpop.xlane.xlu0 %65 }
  0x88   :  { %v67_v10 = vrot.slane %v66_v9, 4 }
  0x8a   :  { %v68_v11 = vadd.f32 %v67_v10, %v66_v9 }
  0x8c   :  { %v69_v12 = vrot.slane %v68_v11, 2 }
  0x8e   :  { %v70_v13 = vadd.f32 %v69_v12, %v68_v11 }
  0x90   :  { %v71_v14 = vrot.slane %v70_v13, 1 }
  0x92   :  { %v72_v15 = vadd.f32 %v71_v14, %v70_v13 }
  0x94   :  { %94 = vpush %v72_v15 }
  0xc5   :  { %s95_s22 = spop %94 }
  0xc6   :  { %s74_s23 = smul.f32 0.00048828125, %s95_s22 }
  0xc8   :  { %76 = sst [smem:[#allocation8]] %s74_s23 }
  0xc9   :  { %85 = dma.smem_to_hbm %s171_s24, 16, %s83_s21, [#allocation5]  }
  0xca   :  { %165 = dma.done.wait [#allocation5], 16  }
  0xcb   :  { %166 = vsyncadd [#allocation5], 4294967280 }
  0xcc   :  { %90 = sfence }
  0xcd   :  { %91 = vsyncpa [#allocation4], 1 }
  0xce   :  { %92 = vsyncpa [#allocation7], 1 }
  0xcf   :  { %93 = vsyncpa [#allocation5], 1 }

</bundles_post_ra>
